<compile_context>
chip_gen: v7x
topology: tpu7x:2x2x1
jax: 0.10.0
libtpu: 0.0.40
codegen_flags: <defaults>
</compile_context>

<pallas_src>
import jax
import jax.numpy as jnp
from jax.experimental import pallas as pl
from jax.experimental.pallas import tpu as pltpu


# ----------------------------------------------------------------------------
# Pallas kernel: one row-block of the batch-folded GCN layer (transposed form)
#   y^T   = x^T @ BD^T            (contracts the block-diagonal vertex axis)
#   out^T = relu(W^T @ y^T + b)
# ----------------------------------------------------------------------------
def gcn_kernel(bd_t_ref, w_t_ref, b_ref, x_t_ref, o_t_ref):
    # bd_t_ref : (R_tile, R_tile)  block-diag(m_norm), bf16   (resident)
    # w_t_ref  : (Dout, Din)       weight^T, f32              (resident)
    # b_ref    : (Dout, 1)         bias column, f32           (resident)
    # x_t_ref  : (Din, R_tile)     x^T row-block, bf16        (streamed)
    # o_t_ref  : (Dout, R_tile)    out^T row-block            (lane-dense store)
    y_t = jnp.dot(x_t_ref[...], bd_t_ref[...],
                  preferred_element_type=jnp.float32)          # (Din, R) f32
    out_t = jnp.dot(w_t_ref[...], y_t,
                    preferred_element_type=jnp.float32)        # (Dout, R) f32
    out_t = out_t + b_ref[...]                                 # lane broadcast
    o_t_ref[...] = jnp.maximum(out_t, 0.0).astype(o_t_ref.dtype)   # ReLU


# ----------------------------------------------------------------------------
# Constant-operand preparation (hoist this out of the hot path when adj/W/b
# are static across calls).
# ----------------------------------------------------------------------------
def _normalize(m):
    colsum = jnp.sum(m, axis=0)                       # torch.sum(m, 0)
    # TODO(synk): PyTorch emits inf/NaN for zero column sums; we map them to 0
    # for numerical safety (identical results for strictly positive adjacency).
    r_inv = jnp.where(colsum > 0, colsum ** -0.5, 0.0)
    return m * r_inv[:, None] * r_inv[None, :]


def _pick_bt_tile(n_batch, V, row_cap):
    """Batches per row tile: largest divisor bt of n_batch with bt*V <= row_cap
    and bt*V a multiple of 128 (lane-tiling constraint when the grid splits);
    if the whole batch fits under the cap, take it all in one step."""
    if n_batch * V <= row_cap:
        return n_batch
    best = 0
    for bt in range(1, n_batch + 1):
        if n_batch % bt:
            continue
        r = bt * V
        if r <= row_cap and r % 128 == 0:
            best = max(best, bt)
    # Fallback: single full-batch tile (block == full array, always lowerable).
    return best if best > 0 else n_batch


def make_gcn_constants(adj, weight, bias, n_batch, *, alpha=1.0, row_cap=256):
    """Precompute per-call-invariant operands. row_cap: 256 (v6e/v7x), 128 (v5e)."""
    V = adj.shape[0]
    adj = adj.astype(jnp.float32)
    m_norm = alpha * _normalize(adj) + (1.0 - alpha) * _normalize(adj @ adj)
    bt = _pick_bt_tile(n_batch, V, row_cap)
    # BD^T for one row tile = I_bt kron m_norm  (so y^T = x^T @ BD^T).
    bd_t = jnp.kron(jnp.eye(bt, dtype=jnp.float32), m_norm).astype(jnp.bfloat16)
    w_t = jnp.transpose(weight.astype(jnp.float32))        # (Dout, Din), tiny -> f32
    b_col = bias.astype(jnp.float32).reshape(-1, 1)        # (Dout, 1)
    return bd_t, w_t, b_col, bt


# ----------------------------------------------------------------------------
# Hot path: reshape/cast/transpose x (one wrapper pass) + fused pallas_call.
# ----------------------------------------------------------------------------
def gcn_apply(bd_t, w_t, b_col, bt, x, *, out_dtype=jnp.float32):
    A, B, V, Din = x.shape
    Dout = w_t.shape[0]
    n_batch = A * B
    total_rows = n_batch * V
    r_tile = bt * V
    assert n_batch % bt == 0 and bd_t.shape == (r_tile, r_tile)
    grid_steps = n_batch // bt

    # TODO(synk): nn.Dropout(p=0.5) is identity in eval mode; training-mode
    # stochastic dropout is not applied here.

    # x^T slab (Din, total_rows): leading-axis reshape + bf16 cast + transpose,
    # all in the wrapper (layout plumbing), one HBM pass over x.
    x_t = jnp.transpose(x.reshape(total_rows, Din).astype(jnp.bfloat16))

    # Dense-within-tile MXU work (the kron block multiplies V/r_tile-fraction
    # zeros, bounded by the row_cap — this is what the MXU actually executes).
    flops = 2 * Din * r_tile * total_rows + 2 * Dout * Din * total_rows
    bytes_accessed = (x_t.size * 2                                   # bf16 in
                      + total_rows * Dout * jnp.dtype(out_dtype).itemsize
                      + bd_t.size * 2 + w_t.size * 4 + b_col.size * 4)

    out_t = pl.pallas_call(
        gcn_kernel,
        out_shape=jax.ShapeDtypeStruct((Dout, total_rows), out_dtype),
        grid_spec=pltpu.PrefetchScalarGridSpec(
            num_scalar_prefetch=0,
            grid=(grid_steps,),
            in_specs=[
                pl.BlockSpec((r_tile, r_tile), lambda n: (0, 0)),  # bd^T (resident)
                pl.BlockSpec((Dout, Din), lambda n: (0, 0)),       # W^T  (resident)
                pl.BlockSpec((Dout, 1), lambda n: (0, 0)),         # bias (resident)
                pl.BlockSpec((Din, r_tile), lambda n: (0, n)),     # x^T row-block
            ],
            out_specs=pl.BlockSpec((Dout, r_tile), lambda n: (0, n)),
        ),
        compiler_params=pltpu.CompilerParams(
            # Row-blocks are independent -> megacore/core shardable.
            dimension_semantics=("parallel",),
            # Explicit budget: working set is <1 MiB after the tile cap, but pin
            # it so the default scoped limit (16 MiB v5e / 32 MiB v6e,v7x) never
            # silently constrains the pipeline as shapes grow.
            vmem_limit_bytes=32 * 1024 * 1024,
        ),
        cost_estimate=pl.CostEstimate(
            flops=flops, transcendentals=0, bytes_accessed=bytes_accessed),
    )(bd_t, w_t, b_col, x_t)

    # out^T (Dout, rows) -> (A, B, V, Dout): wrapper transpose + free reshape.
    return jnp.transpose(out_t).reshape(A, B, V, Dout)


def gcn_forward(adj, x, weight, bias, *, alpha=1.0, row_cap=256,
                out_dtype=jnp.float32):
    """One-shot wrapper reproducing GraphConvolution.forward (eval mode).

    For repeated calls with static adj/weight/bias, call make_gcn_constants()
    once and gcn_apply() per step instead. Set out_dtype=jnp.bfloat16 if the
    consumer accepts it (halves output writeback)."""
    A, B, V, Din = x.shape
    consts = make_gcn_constants(adj, weight, bias, A * B,
                                alpha=alpha, row_cap=row_cap)
    return gcn_apply(*consts, x, out_dtype=out_dtype)


# ----------------------------------------------------------------------------
# Pure-JAX reference (mirrors the PyTorch forward, eval mode)
# ----------------------------------------------------------------------------
def gcn_reference(adj, x, weight, bias, *, alpha=1.0):
    def normalize(m):
        rowsum = jnp.sum(m, axis=0)
        r_inv = rowsum ** -0.5
        return m * r_inv[:, None] * r_inv[None, :]

    adj_norm = normalize(adj)
    sqr_norm = normalize(adj @ adj)
    m_norm = alpha * adj_norm + (1.0 - alpha) * sqr_norm
    x_tmp = jnp.einsum('abcd,de->abce', x, weight)
    x_out = jnp.einsum('ij,abid->abjd', m_norm, x_tmp)
    x_out = x_out + bias
    return jnp.maximum(x_out, 0.0)


if __name__ == "__main__":
    # Small shapes consistent with the module's forward:
    #   x: (A, B, V, input_dim), adj: (V, V)
    A, B = 2, 2
    V = 8              # num_vetex
    input_dim = 16
    output_dim = 32

    key = jax.random.PRNGKey(0)
    k_adj, k_x, k_w, k_b, k_x2 = jax.random.split(key, 5)

    # Positive adjacency so colsum^{-1/2} is finite (mirrors typical GCN adj).
    adj = jax.random.uniform(k_adj, (V, V), dtype=jnp.float32) + jnp.eye(V, dtype=jnp.float32)
    x = jax.random.normal(k_x, (A, B, V, input_dim), dtype=jnp.float32)

    # Deterministic parameter init:
    #   weight ~ xavier_normal_ (std = sqrt(2 / (fan_in + fan_out)))
    #   bias   ~ randn(output_dim)
    xavier_std = (2.0 / (input_dim + output_dim)) ** 0.5
    weight = xavier_std * jax.random.normal(k_w, (input_dim, output_dim), dtype=jnp.float32)
    bias = jax.random.normal(k_b, (output_dim,), dtype=jnp.float32)

    # alpha = 1.0 (module default) and alpha < 1.0 (exercises the adj@adj term,
    # per the accuracy concern in the review).
    for alpha in (1.0, 0.7):
        ref = gcn_reference(adj, x, weight, bias, alpha=alpha)
        out = jax.block_until_ready(gcn_forward(adj, x, weight, bias, alpha=alpha))
        assert out.shape == (A, B, V, output_dim)
        # bf16 streamed x / bd -> relaxed tolerance against the f32 reference.
        assert jnp.allclose(out, ref, atol=5e-2, rtol=5e-2), f"Pallas mismatch (alpha={alpha})"

    # Larger folded batch: exercises the capped row tile (R_tile=256, grid=2),
    # verifying the tiled block-diagonal path matches the reference.
    A2, B2 = 8, 8
    x_big = jax.random.normal(k_x2, (A2, B2, V, input_dim), dtype=jnp.float32)
    ref_big = gcn_reference(adj, x_big, weight, bias, alpha=1.0)
    out_big = jax.block_until_ready(gcn_forward(adj, x_big, weight, bias, alpha=1.0))
    assert out_big.shape == (A2, B2, V, output_dim)
    assert jnp.allclose(out_big, ref_big, atol=5e-2, rtol=5e-2), "Pallas mismatch (tiled path)"

    print("KERNEL_OK")
</pallas_src>

<mosaic_0001>
module attributes {stable_mosaic.version = 11 : i64} {
  func.func @gcn_kernel(%arg0: i32, %arg1: memref<32x32xbf16, #tpu.memory_space<vmem>>, %arg2: memref<32x16xf32, #tpu.memory_space<vmem>>, %arg3: memref<32x1xf32, #tpu.memory_space<vmem>>, %arg4: memref<16x32xbf16, #tpu.memory_space<vmem>>, %arg5: memref<32x32xf32, #tpu.memory_space<vmem>>) attributes {dimension_semantics = [#tpu.dimension_semantics<parallel>], iteration_bounds = array<i64: 1>, scalar_prefetch = 0 : i64, scratch_operands = 0 : i64, tpu.core_type = #tpu.core_type<tc>, window_params = [{pipeline_mode = #tpu.pipeline_mode<synchronous>, transform_indices = @transform_0, window_bounds = array<i64: 32, 32>}, {pipeline_mode = #tpu.pipeline_mode<synchronous>, transform_indices = @transform_1, window_bounds = array<i64: 32, 16>}, {pipeline_mode = #tpu.pipeline_mode<synchronous>, transform_indices = @transform_2, window_bounds = array<i64: 32, 1>}, {transform_indices = @transform_3, window_bounds = array<i64: 16, 32>}, {transform_indices = @transform_4, window_bounds = array<i64: 32, 32>}]} {
    %c0 = arith.constant 0 : index
    %c0_0 = arith.constant 0 : index
    %0 = vector.load %arg4[%c0, %c0_0] : memref<16x32xbf16, #tpu.memory_space<vmem>>, vector<16x32xbf16>
    %c0_1 = arith.constant 0 : index
    %c0_2 = arith.constant 0 : index
    %1 = vector.load %arg1[%c0_1, %c0_2] : memref<32x32xbf16, #tpu.memory_space<vmem>>, vector<32x32xbf16>
    %cst = arith.constant dense<0.000000e+00> : vector<16x32xf32>
    %2 = tpu.matmul %0, %1, %cst {dimension_numbers = #tpu.dot_dimension_numbers<[1], [0], [0], [1], [0, 0, 1, 1], [], []>} : vector<16x32xbf16>, vector<32x32xbf16>, vector<16x32xf32> -> vector<16x32xf32>
    %c0_3 = arith.constant 0 : index
    %c0_4 = arith.constant 0 : index
    %3 = vector.load %arg2[%c0_3, %c0_4] : memref<32x16xf32, #tpu.memory_space<vmem>>, vector<32x16xf32>
    %cst_5 = arith.constant dense<0.000000e+00> : vector<32x32xf32>
    %4 = tpu.matmul %3, %2, %cst_5 {dimension_numbers = #tpu.dot_dimension_numbers<[1], [0], [0], [1], [0, 0, 1, 1], [], []>} : vector<32x16xf32>, vector<16x32xf32>, vector<32x32xf32> -> vector<32x32xf32>
    %c0_6 = arith.constant 0 : index
    %c0_7 = arith.constant 0 : index
    %5 = vector.load %arg3[%c0_6, %c0_7] : memref<32x1xf32, #tpu.memory_space<vmem>>, vector<32x1xf32>
    %6 = vector.broadcast %5 : vector<32x1xf32> to vector<32x32xf32>
    %7 = arith.addf %4, %6 : vector<32x32xf32>
    %cst_8 = arith.constant 0.000000e+00 : f32
    %8 = vector.broadcast %cst_8 : f32 to vector<32x32xf32>
    %9 = arith.maximumf %7, %8 : vector<32x32xf32>
    %c0_9 = arith.constant 0 : index
    %c0_10 = arith.constant 0 : index
    %10 = vector.load %arg5[%c0_9, %c0_10] : memref<32x32xf32, #tpu.memory_space<vmem>>, vector<32x32xf32>
    tpu.vector_store %arg5[%c0_9, %c0_10], %9 {strides = array<i32>} : memref<32x32xf32, #tpu.memory_space<vmem>>, vector<32x32xf32>,
    return
  }
  func.func @transform_0(%arg0: i32) -> (i32, i32) {
    %c0_i32 = arith.constant 0 : i32
    %c0_i32_0 = arith.constant 0 : i32
    %c0_i32_1 = arith.constant 0 : i32
    return %c0_i32, %c0_i32_0 : i32, i32
  }
  func.func @transform_1(%arg0: i32) -> (i32, i32) {
    %c0_i32 = arith.constant 0 : i32
    %c0_i32_0 = arith.constant 0 : i32
    %c0_i32_1 = arith.constant 0 : i32
    return %c0_i32, %c0_i32_0 : i32, i32
  }
  func.func @transform_2(%arg0: i32) -> (i32, i32) {
    %c0_i32 = arith.constant 0 : i32
    %c0_i32_0 = arith.constant 0 : i32
    %c0_i32_1 = arith.constant 0 : i32
    return %c0_i32, %c0_i32_0 : i32, i32
  }
  func.func @transform_3(%arg0: i32) -> (i32, i32) {
    %c0_i32 = arith.constant 0 : i32
    %c0_i32_0 = arith.constant 0 : i32
    return %c0_i32, %arg0 : i32, i32
  }
  func.func @transform_4(%arg0: i32) -> (i32, i32) {
    %c0_i32 = arith.constant 0 : i32
    %c0_i32_0 = arith.constant 0 : i32
    return %c0_i32, %arg0 : i32, i32
  }
}

</mosaic_0001>

<bundles_post_ra>
// kernel: tpu_custom_call.1
= control target key start
LH: loop header
LB: loop body
LE: loop exit
PB: predicated region body
PF: predicated region fallthrough
CT: control target
= control target key end

     0   :  { %v311_v1 = vmov 0.0   ;;  %vm312_vm0 = vmmov 0   ;;  %s396_s0 = inlined_call_operand.vmem [shape: bf16[32,32], index: 0, kind: input, shape index: {}]   ;;  %s397_s1 = inlined_call_operand.vmem [shape: f32[32,16], index: 1, kind: input, shape index: {}]   ;;  %s398_s2 = inlined_call_operand.vmem [shape: f32[32,1], index: 2, kind: input, shape index: {}]   ;;  %s399_s3 = inlined_call_operand.vmem [shape: bf16[16,32], index: 3, kind: input, shape index: {}]   ;;  %s400_s4 = inlined_call_operand.hbm [shape: f32[32,32], index: 4, kind: output, shape index: {}]  }
   0x1   :  { %v284_v0 = vld [vmem:[%s396_s0] sm:$0xff]   ;;  %254 = vmatprep.subr.bf16.mxu0 %v311_v1  ;;  %v285_v2 = vld [vmem:[%s396_s0 + $0x8] sm:$0xff]   ;;  %258 = vmatprep.mubr.msk.bf16.mxu0 %vm312_vm0, %v311_v1 }
   0x2   :  { %255 = vmatpush3.bf16.msra.mxu0 %v284_v0 }
   0x3   :  { %256 = vmatprep.subr.bf16.mxu0 %v311_v1 }
   0x4   :  { %9 = vsyncpa [#allocation3], 0  ;;  %v286_v3 = vld [vmem:[%s399_s3] sm:$0xff]   ;;  %vm42_vm1 = vcmask 261120   ;;  %vm115_vm2 = vcmask 130048   ;;  %v93_v6 = vld [vmem:[%s398_s2 + $0x10] sm:$0xff] }
   0x5   :  { %v87_v4 = vld [vmem:[%s397_s1] sm:$0xff]  ;;  %v313_v7 = vmov 0   ;;  %v92_v8 = vld [vmem:[%s398_s2 + $0x8] sm:$0xff]  ;;  %v94_v9 = vld [vmem:[%s398_s2 + $0x18] sm:$0xff]  ;;  %s314_s8 = smov [#allocation2]  }
   0x6   :  { %257 = vmatpush3.bf16.msra.mxu0 %v285_v2  ;;  %266 = vmatprep.mubr.msk.f32.mxu1 %vm115_vm2, %v87_v4  ;;  %v91_v5 = vld [vmem:[%s398_s2] sm:$0xff]  ;;  %v88_v15 = vld [vmem:[%s397_s1 + $0x8] sm:$0xff]  ;;  %v89_v16 = vld [vmem:[%s397_s1 + $0x10] sm:$0xff]  ;;  %s226_s9 = sshll.u32 %s314_s8, 4  ;;  %s227_s9 = int_to_ptr.vmem [resolvable:$true] %s226_s9 }
   0x7   :  { %282 = vset.pattern.permute.xlu0 %v313_v7  ;;  %283 = vset.pattern.permute.xlu1 %v313_v7  ;;  %v90_v17 = vld [vmem:[%s397_s1 + $0x18] sm:$0xff]  ;;  %s287_s1 = scalar_lea.vmem %s227_s9, 512  ;;  %p292_p1 = scmp.lt.s32.totalorder %s227_s9, %s227_s9 }
   0x8   :  { %97 = vperm.xlu0 %282, %v91_v5   ;;  %107 = vperm.xlu1 %283, %v93_v6   ;;  %p288_p0 = scmp.ne.s32.totalorder %s227_s9, %s287_s1  ;;  %p293_p2 = scmp.lt.s32.totalorder %s287_s1, %s287_s1 }
   0x9   :  { %259 = vmatmul.mubr.msk.bf16.vlgmr.msra.gmra.mrb[0].mxu0 %vm42_vm1, %v286_v3 }
   0xa   :  { %p294_p3 = por %p293_p2, %p292_p1 }
   0xc   :  { %102 = vperm.xlu0 %282, %v92_v8   ;;  %112 = vperm.xlu1 %283, %v94_v9   ;;  %p295_p4 = pnand %p294_p3, %p288_p0 }
  0x87   :  { %v98_v18 = vpop.permute.xlu0 %97  ;;  %v108_v19 = vpop.permute.xlu1 %107 }
  0x8b   :  { %v103_v20 = vpop.permute.xlu0 %102  ;;  %v113_v26 = vpop.permute.xlu1 %112 }
  0xdc   :  { %v80_v10 = vpop.f32.mrb[0].mxu0 }
  0xdd   :  { %v260_v11 = vpop.f32.mrb[1].mxu0 }
  0xde   :  { %v83_v12 = vpop.f32.mrb[2].mxu0 }
  0xdf   :  { %v272_v13 = vpack.c.bf16 %v83_v12, %v80_v10  ;;  %v261_v14 = vpop.f32.mrb[3].mxu0 }
  0xe1   :  { %273 = vmatprep.subr.bf16.mxu1 %v272_v13 }
  0xe2   :  { %275 = vmatpush3.bf16.msra.mxu1 %v272_v13 }
  0xe5   :  { %267 = vmatmul.mubr.msk.f32.vlgmr.msra.gmra.mrb[0].mxu1 %vm115_vm2, %v88_v15 }
  0xe6   :  { %269 = vmatprep.mubr.msk.f32.mxu1 %vm115_vm2, %v89_v16 }
  0xe9   :  { %270 = vmatmul.mubr.msk.f32.gmra.mrb[2].mxu1 %vm115_vm2, %v90_v17 }
 0x1b8   :  { %v268_v21 = vpop.f32.mrb[0].mxu1 }
 0x1b9   :  { %v200_v22 = vadd.f32 %v268_v21, %v103_v20  ;;  %v194_v23 = vpop.f32.mrb[1].mxu1 }
 0x1ba   :  { %v195_v24 = vadd.f32 %v194_v23, %v98_v18 }
 0x1bb   :  { %v214_v25 = vmax.f32 %v200_v22, 0.0 }
 0x1bc   :  { %v213_v27 = vmax.f32 %v195_v24, 0.0  ;;  %v271_v28 = vpop.f32.mrb[2].mxu1 }
 0x1bd   :  { %218 = vst.msk [vmem:[#allocation2 + $0x8] sm:$0xff] %vm42_vm1, %v214_v25  ;;  %v210_v29 = vadd.f32 %v271_v28, %v113_v26  ;;  %v204_v30 = vpop.f32.mrb[3].mxu1 }
 0x1be   :  { %217 = vst.msk [vmem:[#allocation2] sm:$0xff] %vm42_vm1, %v213_v27  ;;  %v205_v31 = vadd.f32 %v204_v30, %v108_v19 }
 0x1bf   :  { %v216_v32 = vmax.f32 %v210_v29, 0.0 }
 0x1c0   :  { %v215_v33 = vmax.f32 %v205_v31, 0.0 }
 0x1c1   :  { %220 = vst.msk [vmem:[#allocation2 + $0x18] sm:$0xff] %vm42_vm1, %v216_v32 }
 0x1c2   :  { %219 = vst.msk [vmem:[#allocation2 + $0x10] sm:$0xff] %vm42_vm1, %v215_v33 }
 0x1c3   :  { %298 = shalt.err (!%p295_p4)
}
 0x1c4   :  { %s299_s12 = scalar_lea.hbm %s400_s4, 512 }
 0x1c5   :  { %p300_p5 = scmp.ne.s32.totalorder %s400_s4, %s299_s12  ;;  %p303_p6 = scmp.lt.u32.totalorder %s299_s12, %s400_s4 }
 0x1c7   :  { %p305_p7 = pnand %p303_p6, %p300_p5 }
 0x1c9   :  { %308 = shalt.err (!%p305_p7)
}
 0x1ca   :  { %s315_s17 = smov 128   ;;  %s316_s18 = smov 8  }
 0x1cb   :  { %232 = dma.vmem_to_hbm [thread:$0]  %s227_s9, 512, %s400_s4, [#allocation3], %s315_s17, %s315_s17, %s316_s18  }
 0x1cc   :  { %309 = dma.done.wait [#allocation3], 512  }
 0x1cd   :  { %310 = vsyncadd [#allocation3], 4294966784 }
 0x1ce   :  { %236 = vsyncpa [#allocation3], 1 }

</bundles_post_ra>
